<compile_context>
chip_gen: v7x
topology: tpu7x:2x2x1
jax: 0.10.0
libtpu: 0.0.40
codegen_flags: <defaults>
</compile_context>

<pallas_src>
import math

import jax
import jax.numpy as jnp
from jax.experimental import pallas as pl
from jax.experimental.pallas import tpu as pltpu


def _round_up(x, m):
    return ((x + m - 1) // m) * m


def _vmem_capacity_bytes():
    try:
        return int(pltpu.get_tpu_info().vmem_capacity_bytes)
    except Exception:
        return 64 * 1024 * 1024          # conservative fallback (v7x-sized)


_VMEM_CAP = _vmem_capacity_bytes()
# 3/4 of physical, capped at 96 MiB (v5e/v6e), floored at 32 MiB -> 48 MiB on v7x.
_VMEM_LIMIT_BYTES = max(32 * 1024 * 1024, min(_VMEM_CAP * 3 // 4, 96 * 1024 * 1024))


# ---------------------------------------------------------------------------
# Kernel 0: one-shot GAT preprocessing.  h = x @ W^T, a_src[j] = h[j].att_src,
# a_dst[i] = h[i].att_dst.  O(N*H^2) work, done ONCE (previously recomputed on
# every row-block grid step).
# TODO(synk): tile this over node row blocks for graphs where [NP, HP] exceeds
# VMEM; at that scale the attn@h aggregation also needs K-tiling.
# ---------------------------------------------------------------------------
def gat_pre_kernel(x_ref, w_ref, asrc_ref, adst_ref, h_ref, asrow_ref, adcol_ref):
    h = jnp.dot(x_ref[...], w_ref[...], preferred_element_type=jnp.float32)        # [NP, HP]
    h_ref[...] = h
    asrow_ref[...] = jax.lax.dot_general(asrc_ref[...], h, (((1,), (1,)), ((), ())),
                                         preferred_element_type=jnp.float32)       # [1, NP]
    adcol_ref[...] = jax.lax.dot_general(h, adst_ref[...], (((1,), (1,)), ((), ())),
                                         preferred_element_type=jnp.float32)       # [NP, 1]


def gat_pre(x_p, w_t, a_src, a_dst):
    NP, HP = x_p.shape
    return pl.pallas_call(
        gat_pre_kernel,
        out_shape=(jax.ShapeDtypeStruct((NP, HP), jnp.float32),
                   jax.ShapeDtypeStruct((1, NP), jnp.float32),
                   jax.ShapeDtypeStruct((NP, 1), jnp.float32)),
        in_specs=[pl.BlockSpec(memory_space=pltpu.MemorySpace.VMEM)] * 4,
        out_specs=(pl.BlockSpec(memory_space=pltpu.MemorySpace.VMEM),) * 3,
        compiler_params=pltpu.CompilerParams(vmem_limit_bytes=_VMEM_LIMIT_BYTES),
    )(x_p, w_t, a_src, a_dst)


# ---------------------------------------------------------------------------
# Kernel 1: GATConv softmax + aggregation + fused ReLU, tiled over target row
# blocks.  Per step: int8 adj block DMA (tile_n*NP bytes) + tile_n*NP*HP MACs.
# ---------------------------------------------------------------------------
def gat_relu_kernel(h_ref, asrow_ref, adcol_ref, bias_ref, adjb_ref, o_ref):
    # e[i, j] = LeakyReLU(a_dst[i] + a_src[j]); i = target (row block), j = source.
    e = adcol_ref[...] + asrow_ref[...]                                             # [T, NP]
    e = jnp.where(e > 0, e, 0.2 * e)                                                # LeakyReLU(0.2)
    e = jnp.where(adjb_ref[...] > 0, e, -1e9)                                       # mask non-edges (int8 adj)
    e = e - jnp.max(e, axis=-1, keepdims=True)
    p = jnp.exp(e)                                                                  # masked entries underflow to 0
    inv = pl.reciprocal(jnp.sum(p, axis=-1, keepdims=True), approx=True)            # EUP, not VPU divide
    attn = p * inv
    out = jnp.dot(attn, h_ref[...], preferred_element_type=jnp.float32) + bias_ref[...]
    o_ref[...] = jnp.maximum(out, 0.0)                                              # fused ReLU


def gat_relu(h_p, a_src_row, a_dst_col, bias, adj_p, *, tile_n):
    NP, HP = h_p.shape
    assert NP % tile_n == 0
    grid = (NP // tile_n,)
    # TODO(synk): if the int8 adj DMA is still exposed at large NP, bump its
    # BlockSpec to pipeline_mode=pl.Buffered(3) and/or build the mask in-kernel
    # from a scalar-prefetched edge list (PrefetchScalarGridSpec + iota compare).
    return pl.pallas_call(
        gat_relu_kernel,
        out_shape=jax.ShapeDtypeStruct((NP, HP), jnp.float32),
        grid=grid,
        in_specs=[
            pl.BlockSpec((NP, HP), lambda i: (0, 0)),        # h, all sources (resident)
            pl.BlockSpec((1, NP), lambda i: (0, 0)),         # a_src row vector
            pl.BlockSpec((tile_n, 1), lambda i: (i, 0)),     # a_dst for the row block
            pl.BlockSpec((1, HP), lambda i: (0, 0)),         # bias
            pl.BlockSpec((tile_n, NP), lambda i: (i, 0)),    # int8 adjacency row block
        ],
        out_specs=pl.BlockSpec((tile_n, HP), lambda i: (i, 0)),
        compiler_params=pltpu.CompilerParams(
            dimension_semantics=("parallel",),
            vmem_limit_bytes=_VMEM_LIMIT_BYTES),
    )(h_p, a_src_row, a_dst_col, bias, adj_p)


# ---------------------------------------------------------------------------
# Kernel 2: Embedding2Score session pooling -> s_h.  seg is built in-kernel
# from the batch ids; W_1 acts on the [BP,HP] v_n array and is broadcast per
# node via seg^T @ t1 (BP << HP contraction instead of HP^2).
# TODO(synk): tile over node blocks ("arbitrary" grid + VMEM s_g accumulator)
# for graphs where [NP, HP] does not fit VMEM.
# ---------------------------------------------------------------------------
def e2s_kernel(h_ref, vn_ref, batch_ref, w1_ref, b1_ref, w2_ref, b2_ref,
               qw_ref, qb_ref, w3a_ref, w3b_ref, b3_ref, sh_ref):
    h = h_ref[...]                                                                  # [NP, HP]
    vn = vn_ref[...]                                                                # [BP, HP]
    NP = h.shape[0]
    BP = vn.shape[0]
    # seg[b, n] = 1 if batch[n] == b (padded nodes carry id BP -> never match).
    seg = (batch_ref[...] ==
           jax.lax.broadcasted_iota(jnp.int32, (BP, NP), 0)).astype(jnp.float32)    # [BP, NP]
    t1 = jnp.dot(vn, w1_ref[...], preferred_element_type=jnp.float32) + b1_ref[...]  # [BP, HP]
    t1n = jax.lax.dot_general(seg, t1, (((0,), (0,)), ((), ())),
                              preferred_element_type=jnp.float32)                    # [NP, HP] per-node broadcast
    g = t1n + jnp.dot(h, w2_ref[...], preferred_element_type=jnp.float32) + b2_ref[...]
    alpha = jnp.sum(jax.nn.sigmoid(g) * qw_ref[...], axis=-1, keepdims=True) + qb_ref[...]
    s_g = jnp.dot(seg, alpha * h, preferred_element_type=jnp.float32)               # segment sum [BP, HP]
    sh_ref[...] = (jnp.dot(vn, w3a_ref[...], preferred_element_type=jnp.float32)
                   + jnp.dot(s_g, w3b_ref[...], preferred_element_type=jnp.float32)
                   + b3_ref[...])                                                    # W3(cat(v_n, s_g))


def e2s(hidden1_p, vn_p, batch_row, prep):
    BP, HP = vn_p.shape
    args = (hidden1_p, vn_p, batch_row,
            prep["w1_t"], prep["b1"], prep["w2_t"], prep["b2"],
            prep["qw"], prep["qb"], prep["w3a_t"], prep["w3b_t"], prep["b3"])
    return pl.pallas_call(
        e2s_kernel,
        out_shape=jax.ShapeDtypeStruct((BP, HP), jnp.float32),
        in_specs=[pl.BlockSpec(memory_space=pltpu.MemorySpace.VMEM)] * len(args),
        out_specs=pl.BlockSpec(memory_space=pltpu.MemorySpace.VMEM),
        compiler_params=pltpu.CompilerParams(vmem_limit_bytes=_VMEM_LIMIT_BYTES),
    )(*args)


# ---------------------------------------------------------------------------
# Kernel 3: item scoring  s_h @ emb^T, tiled over the vocabulary with
# lane-dense output blocks.  emb stays at its NATURAL hidden width (no 4x
# column padding streamed from HBM).
# ---------------------------------------------------------------------------
def score_kernel(sh_ref, emb_ref, o_ref):
    o_ref[...] = jax.lax.dot_general(
        sh_ref[...], emb_ref[...], (((1,), (1,)), ((), ())),   # contract on H
        preferred_element_type=jnp.float32)


def score(s_h_slim, emb_nat, *, tile_v):
    BP, H = s_h_slim.shape
    NV = emb_nat.shape[0]
    assert NV % tile_v == 0
    grid = (NV // tile_v,)
    # TODO(synk): store emb in bf16 for another 2x HBM reduction on v6e/v7x.
    return pl.pallas_call(
        score_kernel,
        out_shape=jax.ShapeDtypeStruct((BP, NV), jnp.float32),
        grid=grid,
        in_specs=[
            pl.BlockSpec((BP, H), lambda j: (0, 0)),
            pl.BlockSpec((tile_v, H), lambda j: (j, 0)),
        ],
        out_specs=pl.BlockSpec((BP, tile_v), lambda j: (0, j)),
        compiler_params=pltpu.CompilerParams(
            dimension_semantics=("parallel",),
            vmem_limit_bytes=_VMEM_LIMIT_BYTES),
    )(s_h_slim, emb_nat)


# ---------------------------------------------------------------------------
# Parameter init (deterministic, matches GNNModel.reset_parameters: U(-stdv, stdv))
# ---------------------------------------------------------------------------
def init_params(key, hidden, n_node):
    stdv = 1.0 / math.sqrt(hidden)

    def u(k, shape):
        return jax.random.uniform(k, shape, jnp.float32, -stdv, stdv)

    ks = jax.random.split(key, 13)
    # TODO(synk): gat2 is constructed in the PyTorch __init__ but never used in forward — omitted.
    return dict(
        emb=u(ks[0], (n_node, hidden)),
        gat_w=u(ks[1], (hidden, hidden)),        # GATConv lin weight [out, in]
        gat_asrc=u(ks[2], (1, hidden)),
        gat_adst=u(ks[3], (1, hidden)),
        gat_b=u(ks[4], (1, hidden)),
        w1=u(ks[5], (hidden, hidden)), b1=u(ks[6], (1, hidden)),
        w2=u(ks[7], (hidden, hidden)), b2=u(ks[8], (1, hidden)),
        qw=u(ks[9], (1, hidden)), qb=u(ks[10], (1, 1)),
        w3=u(ks[11], (hidden, 2 * hidden)), b3=u(ks[12], (1, hidden)),
    )


def prepare_params(params, *, tile_v=2048):
    """One-time prep: transpose Linear weights to [in, out], zero-pad the hidden
    dim to 128 lanes for the MXU matmuls, and pad the vocab rows to a multiple
    of tile_v.  The embedding table keeps its NATURAL hidden width (score
    streams 4x fewer bytes).  Done once, outside the per-step forward."""
    H = params["w1"].shape[0]
    n_node = params["emb"].shape[0]
    HP = _round_up(max(H, 128), 128)
    NV = _round_up(n_node, tile_v)

    def pad2(a, r, c):
        return jnp.zeros((r, c), jnp.float32).at[:a.shape[0], :a.shape[1]].set(a)

    w3 = params["w3"]                                          # [H, 2H] (PyTorch [out, in])
    return dict(
        H=H, HP=HP, n_node=n_node, NV=NV, tile_v=tile_v,
        emb=pad2(params["emb"], NV, H),                        # natural H cols, rows padded to NV
        gat_w_t=pad2(params["gat_w"].T, HP, HP),
        gat_asrc=pad2(params["gat_asrc"], 1, HP),
        gat_adst=pad2(params["gat_adst"], 1, HP),
        gat_b=pad2(params["gat_b"], 1, HP),
        w1_t=pad2(params["w1"].T, HP, HP), b1=pad2(params["b1"], 1, HP),
        w2_t=pad2(params["w2"].T, HP, HP), b2=pad2(params["b2"], 1, HP),
        qw=pad2(params["qw"], 1, HP), qb=params["qb"],
        w3a_t=pad2(w3[:, :H].T, HP, HP),                       # acts on v_n
        w3b_t=pad2(w3[:, H:].T, HP, HP),                       # acts on s_g
        b3=pad2(params["b3"], 1, HP),
    )


# ---------------------------------------------------------------------------
# Forward pass (glue in plain JAX, hot path in the four Pallas kernels)
# ---------------------------------------------------------------------------
def gnn_forward(prep, x_ids, edge_index, batch, sections, *, tile_n=None):
    H, HP = prep["H"], prep["HP"]
    N = int(x_ids.shape[0])
    B = len(sections)

    # Generation-aware tile_n default: 128 on 64 MiB-VMEM parts (v7x), 256 else.
    if tile_n is None:
        tile_n = 128 if _VMEM_CAP <= 64 * 1024 * 1024 else 256
    tile_n = _round_up(max(32, min(tile_n, _round_up(N, 32))), 32)   # mult of 32: int8 adj sublanes
    NP = _round_up(N, tile_n)
    BP = _round_up(B, 8)

    # embedding lookup (data.x - 1); pad node rows + hidden cols once here.
    x_nat = prep["emb"][x_ids - 1]                                           # [N, H]
    x_p = jnp.zeros((NP, HP), jnp.float32).at[:N, :H].set(x_nat)

    # dense int8 adjacency: adj[target, source] = 1 per edge; self-loops (PyG
    # default, also keeps padded rows' softmax finite) folded into ONE scatter.
    loops = jnp.arange(NP, dtype=jnp.int32)
    src = jnp.concatenate([edge_index[0].astype(jnp.int32), loops])
    dst = jnp.concatenate([edge_index[1].astype(jnp.int32), loops])
    adj_p = jnp.zeros((NP, NP), jnp.int8).at[dst, src].set(jnp.int8(1))

    # GAT: hoisted h/a_src/a_dst, then row-block tiled softmax + aggregation.
    h_p, a_src_row, a_dst_col = gat_pre(x_p, prep["gat_w_t"],
                                        prep["gat_asrc"], prep["gat_adst"])
    hidden1_p = gat_relu(h_p, a_src_row, a_dst_col, prep["gat_b"], adj_p,
                         tile_n=tile_n)                                      # [NP, HP]

    # Embedding2Score bookkeeping (gathers = glue).
    sections_a = jnp.asarray(sections, jnp.int32)
    last_idx = jnp.cumsum(sections_a) - 1                                    # last node per session
    last_idx_p = jnp.zeros((BP,), jnp.int32).at[:B].set(last_idx)
    vn_p = hidden1_p[last_idx_p]                                             # [BP, HP]
    batch_row = jnp.full((1, NP), BP, jnp.int32).at[0, :N].set(batch)        # padded nodes -> no segment

    s_h = e2s(hidden1_p, vn_p, batch_row, prep)                              # [BP, HP]
    z_p = score(s_h[:, :H], prep["emb"], tile_v=prep["tile_v"])              # [BP, NV]
    return z_p[:B, :prep["n_node"]]


# ---------------------------------------------------------------------------
# Pure-JAX reference (same dense math, unpadded) for a sanity check.
# ---------------------------------------------------------------------------
def gnn_forward_ref(params, x_ids, edge_index, batch, sections):
    N = x_ids.shape[0]
    B = len(sections)
    emb = params["emb"]
    x = emb[x_ids - 1]
    adj = jnp.zeros((N, N), jnp.float32).at[edge_index[1], edge_index[0]].set(1.0)
    adj = jnp.maximum(adj, jnp.eye(N, dtype=jnp.float32))

    h = x @ params["gat_w"].T
    a_src = jnp.sum(h * params["gat_asrc"], -1, keepdims=True)
    a_dst = jnp.sum(h * params["gat_adst"], -1, keepdims=True)
    e = a_dst + a_src.T
    e = jnp.where(e > 0, e, 0.2 * e)
    e = jnp.where(adj > 0, e, -1e9)
    e = e - jnp.max(e, -1, keepdims=True)
    p = jnp.exp(e) * adj
    attn = p / jnp.sum(p, -1, keepdims=True)
    hidden1 = jnp.maximum(attn @ h + params["gat_b"], 0.0)

    last_idx = jnp.cumsum(jnp.asarray(sections, jnp.int32)) - 1
    vn = hidden1[last_idx]
    vn_rep = vn[batch]
    seg = (batch[None, :] == jnp.arange(B, dtype=batch.dtype)[:, None]).astype(jnp.float32)

    g = vn_rep @ params["w1"].T + params["b1"] + hidden1 @ params["w2"].T + params["b2"]
    alpha = jax.nn.sigmoid(g) @ params["qw"].T + params["qb"]
    s_g = seg @ (alpha * hidden1)
    s_h = jnp.concatenate([vn, s_g], axis=1) @ params["w3"].T + params["b3"]
    return s_h @ emb.T


if __name__ == "__main__":
    key = jax.random.PRNGKey(0)
    hidden_size = 32
    n_node = 200
    sections = [20, 25, 19]      # 3 sessions, N = 64 nodes
    N = sum(sections)
    B = len(sections)

    batch = jnp.concatenate(
        [jnp.full((s,), b, dtype=jnp.int32) for b, s in enumerate(sections)]
    )

    k_params, k_ids = jax.random.split(key)
    params = init_params(k_params, hidden_size, n_node)
    # small demo vocab -> tile_v=128 (2 lane-dense score tiles); default is 2048.
    prep = prepare_params(params, tile_v=128)

    # 1-based item ids (data.x), as in the PyTorch module (it subtracts 1)
    x_ids = jax.random.randint(k_ids, (N,), 1, n_node + 1, dtype=jnp.int32)

    # edges: consecutive items within each session (source -> target)
    srcs, dsts = [], []
    start = 0
    for s in sections:
        for i in range(start, start + s - 1):
            srcs.append(i)
            dsts.append(i + 1)
        start += s
    edge_index = jnp.array([srcs, dsts], dtype=jnp.int32)

    # small demo: tile_n=32 -> 2 GAT row blocks; at real graph sizes use the
    # generation-aware default (128 on v7x, 256 on v5e/v6e).
    z = gnn_forward(prep, x_ids, edge_index, batch, sections, tile_n=32)
    z = jax.block_until_ready(z)

    z_ref = jax.block_until_ready(gnn_forward_ref(params, x_ids, edge_index, batch, sections))
    assert z.shape == (B, n_node)
    assert bool(jnp.allclose(z, z_ref, atol=1e-2, rtol=1e-2)), "kernel/reference mismatch"

    # TODO(synk): optional further wins (not applied for exact-parity safety):
    # bf16 MXU operands for h / attn@h / emb on v6e/v7x, Buffered(3) on the adj
    # and emb BlockSpecs, and in-kernel adjacency construction from a
    # scalar-prefetched edge list to drop the N^2 HBM operand entirely.
    print("KERNEL_OK")
</pallas_src>

<mosaic_0001>
module attributes {stable_mosaic.version = 11 : i64} {
  func.func @gat_pre_kernel(%arg0: memref<64x128xf32, #tpu.memory_space<vmem>>, %arg1: memref<128x128xf32, #tpu.memory_space<vmem>>, %arg2: memref<1x128xf32, #tpu.memory_space<vmem>>, %arg3: memref<1x128xf32, #tpu.memory_space<vmem>>, %arg4: memref<64x128xf32, #tpu.memory_space<vmem>>, %arg5: memref<1x64xf32, #tpu.memory_space<vmem>>, %arg6: memref<64x1xf32, #tpu.memory_space<vmem>>) attributes {dimension_semantics = [], scalar_prefetch = 0 : i64, scratch_operands = 0 : i64, tpu.core_type = #tpu.core_type<tc>} {
    %c0 = arith.constant 0 : index
    %c0_0 = arith.constant 0 : index
    %0 = vector.load %arg0[%c0, %c0_0] : memref<64x128xf32, #tpu.memory_space<vmem>>, vector<64x128xf32>
    %c0_1 = arith.constant 0 : index
    %c0_2 = arith.constant 0 : index
    %1 = vector.load %arg1[%c0_1, %c0_2] : memref<128x128xf32, #tpu.memory_space<vmem>>, vector<128x128xf32>
    %cst = arith.constant dense<0.000000e+00> : vector<64x128xf32>
    %2 = tpu.matmul %0, %1, %cst {dimension_numbers = #tpu.dot_dimension_numbers<[1], [0], [0], [1], [0, 0, 1, 1], [], []>} : vector<64x128xf32>, vector<128x128xf32>, vector<64x128xf32> -> vector<64x128xf32>
    %c0_3 = arith.constant 0 : index
    %c0_4 = arith.constant 0 : index
    %3 = vector.load %arg4[%c0_3, %c0_4] : memref<64x128xf32, #tpu.memory_space<vmem>>, vector<64x128xf32>
    tpu.vector_store %arg4[%c0_3, %c0_4], %2 {strides = array<i32>} : memref<64x128xf32, #tpu.memory_space<vmem>>, vector<64x128xf32>,
    %c0_5 = arith.constant 0 : index
    %c0_6 = arith.constant 0 : index
    %4 = vector.load %arg2[%c0_5, %c0_6] : memref<1x128xf32, #tpu.memory_space<vmem>>, vector<1x128xf32>
    %cst_7 = arith.constant dense<0.000000e+00> : vector<1x64xf32>
    %5 = tpu.matmul %4, %2, %cst_7 {dimension_numbers = #tpu.dot_dimension_numbers<[1], [1], [0], [0], [0, 0, 1, 0], [], []>} : vector<1x128xf32>, vector<64x128xf32>, vector<1x64xf32> -> vector<1x64xf32>
    %c0_8 = arith.constant 0 : index
    %c0_9 = arith.constant 0 : index
    %6 = vector.load %arg5[%c0_8, %c0_9] : memref<1x64xf32, #tpu.memory_space<vmem>>, vector<1x64xf32>
    tpu.vector_store %arg5[%c0_8, %c0_9], %5 {strides = array<i32>} : memref<1x64xf32, #tpu.memory_space<vmem>>, vector<1x64xf32>,
    %c0_10 = arith.constant 0 : index
    %c0_11 = arith.constant 0 : index
    %7 = vector.load %arg3[%c0_10, %c0_11] : memref<1x128xf32, #tpu.memory_space<vmem>>, vector<1x128xf32>
    %cst_12 = arith.constant dense<0.000000e+00> : vector<64x1xf32>
    %8 = tpu.matmul %2, %7, %cst_12 {dimension_numbers = #tpu.dot_dimension_numbers<[1], [1], [0], [0], [0, 0, 1, 0], [], []>} : vector<64x128xf32>, vector<1x128xf32>, vector<64x1xf32> -> vector<64x1xf32>
    %c0_13 = arith.constant 0 : index
    %c0_14 = arith.constant 0 : index
    %9 = vector.load %arg6[%c0_13, %c0_14] : memref<64x1xf32, #tpu.memory_space<vmem>>, vector<64x1xf32>
    tpu.vector_store %arg6[%c0_13, %c0_14], %8 {strides = array<i32>} : memref<64x1xf32, #tpu.memory_space<vmem>>, vector<64x1xf32>,
    return
  }
}

</mosaic_0001>

<bundles_post_ra>
// kernel: tpu_custom_call.1
= control target key start
LH: loop header
LB: loop body
LE: loop exit
PB: predicated region body
PF: predicated region fallthrough
CT: control target
= control target key end

     0   :  { %12 = vsyncpa [#allocation3], 0  ;;  %s721_s0 = inlined_call_operand.hbm [shape: f32[64,128], index: 0, kind: input, shape index: {}]   ;;  %s722_s1 = inlined_call_operand.hbm [shape: f32[128,128], index: 1, kind: input, shape index: {}]   ;;  %s723_s2 = inlined_call_operand.vmem [shape: f32[1,128], index: 2, kind: input, shape index: {}]   ;;  %s724_s3 = inlined_call_operand.vmem [shape: f32[1,128], index: 3, kind: input, shape index: {}]   ;;  %s725_s4 = inlined_call_operand.hbm [shape: f32[64,128], index: 4, kind: output, shape index: {0}]   ;;  %s726_s5 = inlined_call_operand.hbm [shape: f32[1,64], index: 5, kind: output, shape index: {1}]   ;;  %s727_s6 = inlined_call_operand.vmem [shape: f32[64,1], index: 6, kind: output, shape index: {2}]  }
   0x1   :  { %13 = vsyncpa [#allocation6], 0 }
   0x2   :  { %14 = vsyncpa [#allocation4], 0 }
   0x3   :  { %15 = vsyncpa [#allocation9], 0  ;;  %s582_s21 = smov [#allocation2]   ;;  %s486_s25 = scalar_lea.hbm %s721_s0, 1024 }
   0x4   :  { %s21_s22 = sshll.u32 %s582_s21, 4  ;;  %p487_p0 = scmp.ne.s32.totalorder %s721_s0, %s486_s25  ;;  %s22_s22 = int_to_ptr.vmem [resolvable:$true] %s21_s22 }
   0x5   :  { %p490_p1 = scmp.lt.u32.totalorder %s486_s25, %s721_s0 }
   0x7   :  { %p492_p2 = pnand %p490_p1, %p487_p0 }
   0x9   :  { %495 = shalt.err (!%p492_p2)
}
   0xa   :  { %s496_s30 = scalar_lea.vmem %s22_s22, 1024  ;;  %p501_p4 = scmp.lt.s32.totalorder %s22_s22, %s22_s22 }
   0xb   :  { %p497_p3 = scmp.ne.s32.totalorder %s22_s22, %s496_s30  ;;  %p502_p5 = scmp.lt.s32.totalorder %s496_s30, %s496_s30 }
   0xd   :  { %p503_p6 = por %p502_p5, %p501_p4 }
   0xf   :  { %p504_p7 = pnand %p503_p6, %p497_p3 }
  0x11   :  { %507 = shalt.err (!%p504_p7)
}
  0x12   :  { %s583_s7 = smov 128   ;;  %s584_s8 = smov 8  }
  0x13   :  { %27 = dma.hbm_to_vmem [thread:$0]  %s721_s0, 1024, %s22_s22, [#allocation3], %s583_s7, %s583_s7, %s584_s8  }
  0x14   :  { %s585_s11 = smov [#allocation5]   ;;  %s508_s15 = scalar_lea.hbm %s722_s1, 2048 }
  0x15   :  { %s33_s12 = sshll.u32 %s585_s11, 4  ;;  %p509_p8 = scmp.ne.s32.totalorder %s722_s1, %s508_s15  ;;  %s34_s12 = int_to_ptr.vmem [resolvable:$true] %s33_s12 }
  0x16   :  { %p512_p9 = scmp.lt.u32.totalorder %s508_s15, %s722_s1 }
  0x18   :  { %p514_p10 = pnand %p512_p9, %p509_p8 }
  0x1a   :  { %517 = shalt.err (!%p514_p10)
}
  0x1b   :  { %s518_s20 = scalar_lea.vmem %s34_s12, 2048  ;;  %p523_p12 = scmp.lt.s32.totalorder %s34_s12, %s34_s12 }
  0x1c   :  { %p519_p11 = scmp.ne.s32.totalorder %s34_s12, %s518_s20  ;;  %p524_p13 = scmp.lt.s32.totalorder %s518_s20, %s518_s20 }
  0x1e   :  { %p525_p0 = por %p524_p13, %p523_p12 }
  0x20   :  { %p526_p1 = pnand %p525_p0, %p519_p11 }
  0x22   :  { %529 = shalt.err (!%p526_p1)
}
  0x23   :  { %39 = dma.hbm_to_vmem [thread:$0]  %s722_s1, 2048, %s34_s12, [#allocation6], %s583_s7, %s583_s7, %s584_s8  }
  0x24   :  { %574 = dma.done.wait [#allocation3], 1024  }
  0x25   :  { %575 = vsyncadd [#allocation3], 4294966272 }
  0x26   :  { %576 = dma.done.wait [#allocation6], 2048  }
  0x27   :  { %577 = vsyncadd [#allocation6], 4294965248  ;;  %v58_v0 = vld [vmem:[#allocation5] sm:$0xff]  ;;  %v59_v1 = vld [vmem:[#allocation5 + $0x8] sm:$0xff]  ;;  %v586_v32 = vmov 0.0|0.0   ;;  %vm587_vm0 = vmmov 0  }
  0x28   :  { %v60_v2 = vld [vmem:[#allocation5 + $0x10] sm:$0xff]  ;;  %v433_v3 = vpack.c.bf16 %v59_v1, %v58_v0  ;;  %v61_v4 = vld [vmem:[#allocation5 + $0x18] sm:$0xff]  ;;  %v62_v6 = vld [vmem:[#allocation5 + $0x20] sm:$0xff]  ;;  %465 = vmatprep.subr.bf16.mxu1 %v586_v32  ;;  %v588_v33 = vmov 0.0   ;;  %s589_s24 = smov [#allocation7]  }
  0x29   :  { %v437_v5 = vpack.c.bf16 %v61_v4, %v60_v2  ;;  %v63_v7 = vld [vmem:[#allocation5 + $0x28] sm:$0xff]  ;;  %v50_v9 = vld [vmem:[#allocation2] sm:$0xff]  ;;  %v64_v10 = vld [vmem:[#allocation5 + $0x30] sm:$0xff]  ;;  %430 = vmatprep.mubr.msk.f32.mxu1 %vm587_vm0, %v588_v33  ;;  %s305_s25 = sshll.u32 %s589_s24, 4  ;;  %s306_s25 = int_to_ptr.vmem [resolvable:$true] %s305_s25 }
  0x2a   :  { %434 = vmatprep.subr.bf16.mxu0 %v433_v3  ;;  %v441_v8 = vpack.c.bf16 %v63_v7, %v62_v6  ;;  %v65_v11 = vld [vmem:[#allocation5 + $0x38] sm:$0xff]  ;;  %402 = vmatprep.mubr.f32.mxu0 %v50_v9  ;;  %v66_v13 = vld [vmem:[#allocation5 + $0x40] sm:$0xff]  ;;  %v67_v14 = vld [vmem:[#allocation5 + $0x48] sm:$0xff]  ;;  %s530_s26 = scalar_lea.vmem %s306_s25, 1024  ;;  %p535_p3 = scmp.lt.s32.totalorder %s306_s25, %s306_s25 }
  0x2b   :  { %436 = vmatpush3.bf16.msra.mxu0 %v433_v3  ;;  %v445_v12 = vpack.c.bf16 %v65_v11, %v64_v10  ;;  %v449_v15 = vpack.c.bf16 %v67_v14, %v66_v13  ;;  %v68_v16 = vld [vmem:[#allocation5 + $0x50] sm:$0xff]  ;;  %v69_v17 = vld [vmem:[#allocation5 + $0x58] sm:$0xff]  ;;  %v70_v19 = vld [vmem:[#allocation5 + $0x60] sm:$0xff]  ;;  %p531_p2 = scmp.ne.s32.totalorder %s306_s25, %s530_s26  ;;  %p536_p4 = scmp.lt.s32.totalorder %s530_s26, %s530_s26 }
  0x2c   :  { %438 = vmatprep.subr.bf16.mxu0 %v437_v5  ;;  %v453_v18 = vpack.c.bf16 %v69_v17, %v68_v16  ;;  %v71_v20 = vld [vmem:[#allocation5 + $0x68] sm:$0xff]  ;;  %v72_v22 = vld [vmem:[#allocation5 + $0x70] sm:$0xff]  ;;  %v73_v23 = vld [vmem:[#allocation5 + $0x78] sm:$0xff] }
  0x2d   :  { %v457_v21 = vpack.c.bf16 %v71_v20, %v70_v19  ;;  %v461_v24 = vpack.c.bf16 %v73_v23, %v72_v22  ;;  %v51_v25 = vld [vmem:[#allocation2 + $0x8] sm:$0xff]  ;;  %v52_v26 = vld [vmem:[#allocation2 + $0x10] sm:$0xff]  ;;  %v53_v27 = vld [vmem:[#allocation2 + $0x18] sm:$0xff]  ;;  %p537_p5 = por %p536_p4, %p535_p3 }
  0x2e   :  { %v54_v28 = vld [vmem:[#allocation2 + $0x20] sm:$0xff]  ;;  %v55_v29 = vld [vmem:[#allocation2 + $0x28] sm:$0xff]  ;;  %v56_v30 = vld [vmem:[#allocation2 + $0x30] sm:$0xff] }
  0x2f   :  { %440 = vmatpush3.bf16.msra.mxu0 %v437_v5  ;;  %v57_v31 = vld [vmem:[#allocation2 + $0x38] sm:$0xff]  ;;  %v336_v34 = vld [vmem:[%s724_s3] ss:$0 sm:$0xff]  ;;  %p538_p6 = pnand %p537_p5, %p531_p2 }
  0x30   :  { %442 = vmatprep.subr.bf16.mxu0 %v441_v8  ;;  %v187_v55 = vld [vmem:[%s723_s2] sm:$0x1] }
  0x33   :  { %444 = vmatpush3.bf16.msra.mxu0 %v441_v8 }
  0x34   :  { %446 = vmatprep.subr.bf16.mxu0 %v445_v12 }
  0x37   :  { %448 = vmatpush3.bf16.msra.mxu0 %v445_v12 }
  0x38   :  { %450 = vmatprep.subr.bf16.mxu0 %v449_v15 }
  0x3b   :  { %452 = vmatpush3.bf16.msra.mxu0 %v449_v15 }
  0x3c   :  { %454 = vmatprep.subr.bf16.mxu0 %v453_v18 }
  0x3f   :  { %456 = vmatpush3.bf16.msra.mxu0 %v453_v18 }
  0x40   :  { %458 = vmatprep.subr.bf16.mxu0 %v457_v21 }
  0x43   :  { %460 = vmatpush3.bf16.msra.mxu0 %v457_v21 }
  0x44   :  { %462 = vmatprep.subr.bf16.mxu0 %v461_v24 }
  0x47   :  { %464 = vmatpush3.bf16.msra.mxu0 %v461_v24 }
  0x4a   :  { %403 = vmatmul.mubr.f32.vlgmr.msra.gmra.mrb[0].mxu0 %v51_v25 }
  0x4b   :  { %405 = vmatprep.mubr.f32.mxu0 %v52_v26 }
  0x4e   :  { %406 = vmatmul.mubr.f32.gmra.mrb[2].mxu0 %v53_v27 }
  0x4f   :  { %408 = vmatprep.mubr.f32.mxu0 %v54_v28 }
  0x52   :  { %409 = vmatmul.mubr.f32.gmra.mrb[4].mxu0 %v55_v29 }
  0x53   :  { %411 = vmatprep.mubr.f32.mxu0 %v56_v30 }
  0x56   :  { %412 = vmatmul.mubr.f32.gmra.mrb[6].mxu0 %v57_v31 }
 0x11d   :  { %v404_v35 = vpop.f32.mrb[0].mxu0 }
 0x11e   :  { %180 = vst [vmem:[#allocation7 + $0x8] sm:$0xff] %v404_v35  ;;  %v140_v36 = vpop.f32.mrb[1].mxu0  ;;  %v268_v37 = vmul.f32 %v404_v35, %v336_v34 }
 0x11f   :  { %179 = vst [vmem:[#allocation7] sm:$0xff] %v140_v36  ;;  %v466_v38 = vpack.c.bf16 %v404_v35, %v140_v36  ;;  %v267_v40 = vmul.f32 %v336_v34, %v140_v36 }
 0x120   :  { %277 = vadd.xlane.f32.xlu0 %v268_v37 }
 0x121   :  { %v407_v39 = vpop.f32.mrb[2].mxu0  ;;  %467 = vmatpush3.bf16.xpose.msra.mxu1 %v466_v38 }
 0x122   :  { %182 = vst [vmem:[#allocation7 + $0x18] sm:$0xff] %v407_v39  ;;  %v270_v41 = vmul.f32 %v407_v39, %v336_v34  ;;  %v150_v42 = vpop.f32.mrb[3].mxu0  ;;  %468 = vmatprep.subr.bf16.mxu1 %v586_v32 }
 0x123   :  { %181 = vst [vmem:[#allocation7 + $0x10] sm:$0xff] %v150_v42  ;;  %v469_v43 = vpack.c.bf16 %v407_v39, %v150_v42  ;;  %v269_v44 = vmul.f32 %v336_v34, %v150_v42 }
 0x124   :  { %275 = vadd.xlane.f32.xlu0 %v267_v40  ;;  %281 = vadd.xlane.f32.xlu1 %v270_v41 }
 0x125   :  { %v410_v45 = vpop.f32.mrb[4].mxu0 }
 0x126   :  { %184 = vst [vmem:[#allocation7 + $0x28] sm:$0xff] %v410_v45  ;;  %v160_v46 = vpop.f32.mrb[5].mxu0  ;;  %v272_v49 = vmul.f32 %v410_v45, %v336_v34 }
 0x127   :  { %183 = vst [vmem:[#allocation7 + $0x20] sm:$0xff] %v160_v46  ;;  %v472_v47 = vpack.c.bf16 %v410_v45, %v160_v46  ;;  %v271_v48 = vmul.f32 %v336_v34, %v160_v46 }
 0x128   :  { %279 = vadd.xlane.f32.xlu1 %v269_v44 }
 0x129   :  { %470 = vmatpush3.bf16.xpose.msra.mxu1 %v469_v43  ;;  %283 = vadd.xlane.f32.xlu0 %v271_v48  ;;  %v413_v50 = vpop.f32.mrb[6].mxu0 }
 0x12a   :  { %471 = vmatprep.subr.bf16.mxu1 %v586_v32  ;;  %186 = vst [vmem:[#allocation7 + $0x38] sm:$0xff] %v413_v50  ;;  %v170_v51 = vpop.f32.mrb[7].mxu0  ;;  %v274_v54 = vmul.f32 %v413_v50, %v336_v34 }
 0x12b   :  { %185 = vst [vmem:[#allocation7 + $0x30] sm:$0xff] %v170_v51  ;;  %v475_v52 = vpack.c.bf16 %v413_v50, %v170_v51  ;;  %v273_v53 = vmul.f32 %v336_v34, %v170_v51 }
 0x12c   :  { %285 = vadd.xlane.f32.xlu1 %v272_v49 }
 0x12d   :  { %287 = vadd.xlane.f32.xlu0 %v273_v53 }
 0x130   :  { %289 = vadd.xlane.f32.xlu1 %v274_v54 }
 0x131   :  { %473 = vmatpush3.bf16.xpose.msra.mxu1 %v472_v47 }
 0x132   :  { %474 = vmatprep.subr.bf16.mxu1 %v586_v32 }
 0x139   :  { %476 = vmatpush3.bf16.xpose.msra.mxu1 %v475_v52 }
 0x140   :  { %431 = vmatmul.mubr.f32.vlgmr.msra.gmra.mrb[0].mxu1 %v187_v55 }
 0x141   :  { %541 = shalt.err (!%p538_p6)
}
 0x142   :  { %s542_s29 = scalar_lea.hbm %s725_s4, 1024 }
 0x143   :  { %p543_p7 = scmp.ne.s32.totalorder %s725_s4, %s542_s29  ;;  %p546_p8 = scmp.lt.u32.totalorder %s542_s29, %s725_s4 }
 0x145   :  { %p548_p9 = pnand %p546_p8, %p543_p7 }
 0x147   :  { %551 = shalt.err (!%p548_p9)
}
 0x148   :  { %311 = dma.vmem_to_hbm [thread:$0]  %s306_s25, 1024, %s725_s4, [#allocation4], %s583_s7, %s583_s7, %s584_s8   ;;  %vm291_vm1 = vcmask 7168   ;;  %vm258_vm2 = vcmask 516096  }
 0x149   :  { %s590_s23 = smov [#allocation8]  }
 0x14a   :  { %s318_s24 = sshll.u32 %s590_s23, 4  ;;  %s319_s24 = int_to_ptr.vmem [resolvable:$true] %s318_s24 }
 0x14b   :  { %s552_s25 = scalar_lea.vmem %s319_s24, 16  ;;  %s556_s26 = scalar_lea.vmem %s319_s24, 32 }
 0x14c   :  { %p553_p10 = scmp.ne.s32.totalorder %s319_s24, %s552_s25  ;;  %p557_p11 = scmp.lt.s32.totalorder %s319_s24, %s319_s24 }
 0x14d   :  { %p558_p12 = scmp.lt.s32.totalorder %s556_s26, %s552_s25 }
 0x14f   :  { %p559_p13 = por %p558_p12, %p557_p11 }
 0x151   :  { %p560_p0 = pnand %p559_p13, %p553_p10 }
 0x1ad   :  { %v278_v56 = vpop.xlane.xlu0 %277 }
 0x1ae   :  { %293 = vst.msk [vmem:[%s727_s6 + $0x8] sm:$0xff] %vm291_vm1, %v278_v56 }
 0x1b1   :  { %v276_v57 = vpop.xlane.xlu0 %275  ;;  %v282_v58 = vpop.xlane.xlu1 %281 }
 0x1b2   :  { %292 = vst.msk [vmem:[%s727_s6] sm:$0xff] %vm291_vm1, %v276_v57  ;;  %295 = vst.msk [vmem:[%s727_s6 + $0x18] sm:$0xff] %vm291_vm1, %v282_v58 }
 0x1b5   :  { %v280_v59 = vpop.xlane.xlu1 %279 }
 0x1b6   :  { %294 = vst.msk [vmem:[%s727_s6 + $0x10] sm:$0xff] %vm291_vm1, %v280_v59  ;;  %v284_v60 = vpop.xlane.xlu0 %283 }
 0x1b7   :  { %296 = vst.msk [vmem:[%s727_s6 + $0x20] sm:$0xff] %vm291_vm1, %v284_v60 }
 0x1b9   :  { %v286_v61 = vpop.xlane.xlu1 %285 }
 0x1ba   :  { %297 = vst.msk [vmem:[%s727_s6 + $0x28] sm:$0xff] %vm291_vm1, %v286_v61  ;;  %v288_v62 = vpop.xlane.xlu0 %287 }
 0x1bb   :  { %298 = vst.msk [vmem:[%s727_s6 + $0x30] sm:$0xff] %vm291_vm1, %v288_v62 }
 0x1bd   :  { %v290_v63 = vpop.xlane.xlu1 %289 }
 0x1be   :  { %299 = vst.msk [vmem:[%s727_s6 + $0x38] sm:$0xff] %vm291_vm1, %v290_v63 }
 0x213   :  { %v254_v0 = vpop.f32.mrb[0].mxu1 }
 0x214   :  { %v432_v1 = vpop.f32.mrb[1].mxu1  ;;  %259 = vst.msk [vmem:[#allocation8] sm:$0x1] %vm258_vm2, %v254_v0 }
 0x215   :  { %563 = shalt.err (!%p560_p0)
}
 0x216   :  { %s564_s29 = scalar_lea.hbm %s726_s5, 16 }
 0x217   :  { %p565_p1 = scmp.ne.s32.totalorder %s726_s5, %s564_s29  ;;  %p568_p2 = scmp.lt.u32.totalorder %s564_s29, %s726_s5 }
 0x219   :  { %p570_p3 = pnand %p568_p2, %p565_p1 }
 0x21b   :  { %573 = shalt.err (!%p570_p3)
}
 0x21c   :  { %321 = dma.vmem_to_hbm [thread:$0]  %s319_s24, 16, %s726_s5, [#allocation9]  }
 0x21d   :  { %578 = dma.done.wait [#allocation4], 1024  }
 0x21e   :  { %579 = vsyncadd [#allocation4], 4294966272 }
 0x21f   :  { %580 = dma.done.wait [#allocation9], 16  }
 0x220   :  { %581 = vsyncadd [#allocation9], 4294967280 }
 0x221   :  { %332 = vsyncpa [#allocation3], 1 }
 0x222   :  { %333 = vsyncpa [#allocation6], 1 }
 0x223   :  { %334 = vsyncpa [#allocation4], 1 }
 0x224   :  { %335 = vsyncpa [#allocation9], 1 }

</bundles_post_ra>
